<compile_context>
chip_gen: v6e
topology: v6e:2x2x1
jax: 0.10.0
libtpu: 0.0.40
codegen_flags: <defaults>
</compile_context>

<pallas_src>
import jax
import jax.numpy as jnp
from jax.experimental import pallas as pl
from jax.experimental.pallas import tpu as pltpu


LATENT_DIM = 32
HIDDEN1 = 128
HIDDEN2 = 500
HIDDEN2_PAD = 512      # round 500 up to a multiple of 128 lanes
FUTURE_STEPS = 8
MAX_TILE_B = 256       # batch rows per grid step (multiple of 8)


def decoder_kernel(z_ref,
                   w_fc1_ref, b_fc1_ref,
                   w_fc2_ref, b_fc2_ref,
                   w_fused_ref, b_fused_ref,
                   y_ref):
    # fc1 + ReLU (bf16 operands on MXU, f32 accumulate)
    z = z_ref[...].astype(jnp.bfloat16)
    h1 = jnp.dot(z, w_fc1_ref[...], preferred_element_type=jnp.float32)
    h1 = jnp.maximum(h1 + b_fc1_ref[...], 0.0)

    # fc2 + ReLU (hidden padded 500 -> 512 with zero columns; relu(0)=0, so exact)
    h2 = jnp.dot(h1.astype(jnp.bfloat16), w_fc2_ref[...],
                 preferred_element_type=jnp.float32)
    h2 = jnp.maximum(h2 + b_fc2_ref[...], 0.0)

    # dropout(p=0.2) in eval mode == identity

    # out + final_fcn fused into one matmul
    y = jnp.dot(h2.astype(jnp.bfloat16), w_fused_ref[...],
                preferred_element_type=jnp.float32)
    y_ref[...] = (y + b_fused_ref[...]).astype(y_ref.dtype)


def decoder_forward(z, prep):
    """z: (B, latent_dim) f32 -> (B, future_steps) f32."""
    B, latent_dim = z.shape
    future_steps = prep["w_fused"].shape[1]

    tile_b = B if B < MAX_TILE_B else MAX_TILE_B
    grid = (pl.cdiv(B, tile_b),)

    def resident(arr):
        # Full-array block, same block index every grid step -> stays VMEM-resident
        # (Pallas skips the re-DMA when the block index does not change).
        return pl.BlockSpec(arr.shape, lambda i: (0, 0))

    return pl.pallas_call(
        decoder_kernel,
        out_shape=jax.ShapeDtypeStruct((B, future_steps), jnp.float32),
        grid=grid,
        in_specs=[
            pl.BlockSpec((tile_b, latent_dim), lambda i: (i, 0)),   # batch-tiled z
            resident(prep["w_fc1"]), resident(prep["b_fc1"]),
            resident(prep["w_fc2"]), resident(prep["b_fc2"]),
            resident(prep["w_fused"]), resident(prep["b_fused"]),
        ],
        out_specs=pl.BlockSpec((tile_b, future_steps), lambda i: (i, 0)),
        compiler_params=pltpu.CompilerParams(
            dimension_semantics=("parallel",),   # shard batch tiles over v7x's 2 TCs
            vmem_limit_bytes=8 << 20,            # actual footprint is well under 1 MiB
        ),
    )(
        z,
        prep["w_fc1"], prep["b_fc1"],
        prep["w_fc2"], prep["b_fc2"],
        prep["w_fused"], prep["b_fused"],
    )


def init_params(key, latent_dim, future_steps):
    """Raw f32 parameters; shapes match the PyTorch module (stored as (in, out))."""
    ks = jax.random.split(key, 8)

    def lin(kw, kb, fan_in, fan_out):
        bound = 1.0 / jnp.sqrt(fan_in)
        w = jax.random.uniform(kw, (fan_in, fan_out), jnp.float32, -bound, bound)
        b = jax.random.uniform(kb, (1, fan_out), jnp.float32, -bound, bound)
        return w, b

    w_fc1, b_fc1 = lin(ks[0], ks[1], latent_dim, HIDDEN1)
    w_fc2, b_fc2 = lin(ks[2], ks[3], HIDDEN1, HIDDEN2)
    w_out, b_out = lin(ks[4], ks[5], HIDDEN2, future_steps)
    w_fin, b_fin = lin(ks[6], ks[7], future_steps, future_steps)

    return {
        "w_fc1": w_fc1, "b_fc1": b_fc1,
        "w_fc2": w_fc2, "b_fc2": b_fc2,
        "w_out": w_out, "b_out": b_out,
        "w_fin": w_fin, "b_fin": b_fin,
    }


def prepare_params(raw):
    """Fuse out+final_fcn, zero-pad the 500-wide hidden dim to 512, cast weights to bf16."""
    # Exact algebraic fusion (no nonlinearity between the two linears).
    w_fused = raw["w_out"] @ raw["w_fin"]                     # (500, F)
    b_fused = raw["b_out"] @ raw["w_fin"] + raw["b_fin"]      # (1, F)

    pad = HIDDEN2_PAD - raw["w_fc2"].shape[1]
    w_fc2 = jnp.pad(raw["w_fc2"], ((0, 0), (0, pad)))         # zero extra columns
    b_fc2 = jnp.pad(raw["b_fc2"], ((0, 0), (0, pad)))
    w_fused = jnp.pad(w_fused, ((0, pad), (0, 0)))            # zero extra rows

    wd = jnp.bfloat16
    return {
        "w_fc1": raw["w_fc1"].astype(wd), "b_fc1": raw["b_fc1"],
        "w_fc2": w_fc2.astype(wd),        "b_fc2": b_fc2,
        "w_fused": w_fused.astype(wd),    "b_fused": b_fused,
    }


def decoder_reference(z, prep):
    """Pure-JAX reference using the same prepared (fused/padded/bf16) parameters."""
    zb = z.astype(jnp.bfloat16)
    h1 = jnp.maximum(
        jnp.dot(zb, prep["w_fc1"], preferred_element_type=jnp.float32) + prep["b_fc1"], 0.0)
    h2 = jnp.maximum(
        jnp.dot(h1.astype(jnp.bfloat16), prep["w_fc2"],
                preferred_element_type=jnp.float32) + prep["b_fc2"], 0.0)
    return jnp.dot(h2.astype(jnp.bfloat16), prep["w_fused"],
                   preferred_element_type=jnp.float32) + prep["b_fused"]


if __name__ == "__main__":
    key = jax.random.PRNGKey(0)
    k_params, k_z1, k_z2 = jax.random.split(key, 3)

    raw = init_params(k_params, LATENT_DIM, FUTURE_STEPS)
    prep = prepare_params(raw)

    # Small-shape check (B=2, single grid step).
    z = jax.random.normal(k_z1, (2, LATENT_DIM), jnp.float32)
    y = jax.block_until_ready(decoder_forward(z, prep))
    assert y.shape == (2, FUTURE_STEPS)
    assert jnp.allclose(y, decoder_reference(z, prep), atol=1e-3, rtol=1e-3), \
        "mismatch vs reference (B=2)"

    # Multi-tile check (B=512 -> 2 batch tiles, exercises the pipelined grid path).
    z_big = jax.random.normal(k_z2, (512, LATENT_DIM), jnp.float32)
    y_big = jax.block_until_ready(decoder_forward(z_big, prep))
    assert y_big.shape == (512, FUTURE_STEPS)
    assert jnp.allclose(y_big, decoder_reference(z_big, prep), atol=1e-3, rtol=1e-3), \
        "mismatch vs reference (B=512)"

    print("KERNEL_OK")
</pallas_src>

<mosaic_0001>
module attributes {stable_mosaic.version = 11 : i64} {
  func.func @decoder_kernel(%arg0: i32, %arg1: memref<2x32xf32, #tpu.memory_space<vmem>>, %arg2: memref<32x128xbf16, #tpu.memory_space<vmem>>, %arg3: memref<1x128xf32, #tpu.memory_space<vmem>>, %arg4: memref<128x512xbf16, #tpu.memory_space<vmem>>, %arg5: memref<1x512xf32, #tpu.memory_space<vmem>>, %arg6: memref<512x8xbf16, #tpu.memory_space<vmem>>, %arg7: memref<1x8xf32, #tpu.memory_space<vmem>>, %arg8: memref<2x8xf32, #tpu.memory_space<vmem>>) attributes {dimension_semantics = [#tpu.dimension_semantics<parallel>], iteration_bounds = array<i64: 1>, scalar_prefetch = 0 : i64, scratch_operands = 0 : i64, tpu.core_type = #tpu.core_type<tc>, window_params = [{transform_indices = @transform_0, window_bounds = array<i64: 2, 32>}, {pipeline_mode = #tpu.pipeline_mode<synchronous>, transform_indices = @transform_1, window_bounds = array<i64: 32, 128>}, {pipeline_mode = #tpu.pipeline_mode<synchronous>, transform_indices = @transform_2, window_bounds = array<i64: 1, 128>}, {pipeline_mode = #tpu.pipeline_mode<synchronous>, transform_indices = @transform_3, window_bounds = array<i64: 128, 512>}, {pipeline_mode = #tpu.pipeline_mode<synchronous>, transform_indices = @transform_4, window_bounds = array<i64: 1, 512>}, {pipeline_mode = #tpu.pipeline_mode<synchronous>, transform_indices = @transform_5, window_bounds = array<i64: 512, 8>}, {pipeline_mode = #tpu.pipeline_mode<synchronous>, transform_indices = @transform_6, window_bounds = array<i64: 1, 8>}, {transform_indices = @transform_7, window_bounds = array<i64: 2, 8>}]} {
    %c0 = arith.constant 0 : index
    %c0_0 = arith.constant 0 : index
    %0 = vector.load %arg1[%c0, %c0_0] : memref<2x32xf32, #tpu.memory_space<vmem>>, vector<2x32xf32>
    %1 = arith.truncf %0 : vector<2x32xf32> to vector<2x32xbf16>
    %c0_1 = arith.constant 0 : index
    %c0_2 = arith.constant 0 : index
    %2 = vector.load %arg2[%c0_1, %c0_2] : memref<32x128xbf16, #tpu.memory_space<vmem>>, vector<32x128xbf16>
    %cst = arith.constant dense<0.000000e+00> : vector<2x128xf32>
    %3 = tpu.matmul %1, %2, %cst {dimension_numbers = #tpu.dot_dimension_numbers<[1], [0], [0], [1], [0, 0, 1, 1], [], []>} : vector<2x32xbf16>, vector<32x128xbf16>, vector<2x128xf32> -> vector<2x128xf32>
    %c0_3 = arith.constant 0 : index
    %c0_4 = arith.constant 0 : index
    %4 = vector.load %arg3[%c0_3, %c0_4] : memref<1x128xf32, #tpu.memory_space<vmem>>, vector<1x128xf32>
    %5 = vector.broadcast %4 : vector<1x128xf32> to vector<2x128xf32>
    %6 = arith.addf %3, %5 : vector<2x128xf32>
    %cst_5 = arith.constant 0.000000e+00 : f32
    %7 = vector.broadcast %cst_5 : f32 to vector<2x128xf32>
    %8 = arith.maximumf %6, %7 : vector<2x128xf32>
    %9 = arith.truncf %8 : vector<2x128xf32> to vector<2x128xbf16>
    %c0_6 = arith.constant 0 : index
    %c0_7 = arith.constant 0 : index
    %10 = vector.load %arg4[%c0_6, %c0_7] : memref<128x512xbf16, #tpu.memory_space<vmem>>, vector<128x512xbf16>
    %cst_8 = arith.constant dense<0.000000e+00> : vector<2x512xf32>
    %11 = tpu.matmul %9, %10, %cst_8 {dimension_numbers = #tpu.dot_dimension_numbers<[1], [0], [0], [1], [0, 0, 1, 1], [], []>} : vector<2x128xbf16>, vector<128x512xbf16>, vector<2x512xf32> -> vector<2x512xf32>
    %c0_9 = arith.constant 0 : index
    %c0_10 = arith.constant 0 : index
    %12 = vector.load %arg5[%c0_9, %c0_10] : memref<1x512xf32, #tpu.memory_space<vmem>>, vector<1x512xf32>
    %13 = vector.broadcast %12 : vector<1x512xf32> to vector<2x512xf32>
    %14 = arith.addf %11, %13 : vector<2x512xf32>
    %cst_11 = arith.constant 0.000000e+00 : f32
    %15 = vector.broadcast %cst_11 : f32 to vector<2x512xf32>
    %16 = arith.maximumf %14, %15 : vector<2x512xf32>
    %17 = arith.truncf %16 : vector<2x512xf32> to vector<2x512xbf16>
    %c0_12 = arith.constant 0 : index
    %c0_13 = arith.constant 0 : index
    %18 = vector.load %arg6[%c0_12, %c0_13] : memref<512x8xbf16, #tpu.memory_space<vmem>>, vector<512x8xbf16>
    %cst_14 = arith.constant dense<0.000000e+00> : vector<2x8xf32>
    %19 = tpu.matmul %17, %18, %cst_14 {dimension_numbers = #tpu.dot_dimension_numbers<[1], [0], [0], [1], [0, 0, 1, 1], [], []>} : vector<2x512xbf16>, vector<512x8xbf16>, vector<2x8xf32> -> vector<2x8xf32>
    %c0_15 = arith.constant 0 : index
    %c0_16 = arith.constant 0 : index
    %20 = vector.load %arg7[%c0_15, %c0_16] : memref<1x8xf32, #tpu.memory_space<vmem>>, vector<1x8xf32>
    %21 = vector.broadcast %20 : vector<1x8xf32> to vector<2x8xf32>
    %22 = arith.addf %19, %21 : vector<2x8xf32>
    %c0_17 = arith.constant 0 : index
    %c0_18 = arith.constant 0 : index
    %23 = vector.load %arg8[%c0_17, %c0_18] : memref<2x8xf32, #tpu.memory_space<vmem>>, vector<2x8xf32>
    tpu.vector_store %arg8[%c0_17, %c0_18], %22 {strides = array<i32>} : memref<2x8xf32, #tpu.memory_space<vmem>>, vector<2x8xf32>,
    return
  }
  func.func @transform_0(%arg0: i32) -> (i32, i32) {
    %c0_i32 = arith.constant 0 : i32
    %c0_i32_0 = arith.constant 0 : i32
    return %arg0, %c0_i32 : i32, i32
  }
  func.func @transform_1(%arg0: i32) -> (i32, i32) {
    %c0_i32 = arith.constant 0 : i32
    %c0_i32_0 = arith.constant 0 : i32
    %c0_i32_1 = arith.constant 0 : i32
    return %c0_i32, %c0_i32_0 : i32, i32
  }
  func.func @transform_2(%arg0: i32) -> (i32, i32) {
    %c0_i32 = arith.constant 0 : i32
    %c0_i32_0 = arith.constant 0 : i32
    %c0_i32_1 = arith.constant 0 : i32
    return %c0_i32, %c0_i32_0 : i32, i32
  }
  func.func @transform_3(%arg0: i32) -> (i32, i32) {
    %c0_i32 = arith.constant 0 : i32
    %c0_i32_0 = arith.constant 0 : i32
    %c0_i32_1 = arith.constant 0 : i32
    return %c0_i32, %c0_i32_0 : i32, i32
  }
  func.func @transform_4(%arg0: i32) -> (i32, i32) {
    %c0_i32 = arith.constant 0 : i32
    %c0_i32_0 = arith.constant 0 : i32
    %c0_i32_1 = arith.constant 0 : i32
    return %c0_i32, %c0_i32_0 : i32, i32
  }
  func.func @transform_5(%arg0: i32) -> (i32, i32) {
    %c0_i32 = arith.constant 0 : i32
    %c0_i32_0 = arith.constant 0 : i32
    %c0_i32_1 = arith.constant 0 : i32
    return %c0_i32, %c0_i32_0 : i32, i32
  }
  func.func @transform_6(%arg0: i32) -> (i32, i32) {
    %c0_i32 = arith.constant 0 : i32
    %c0_i32_0 = arith.constant 0 : i32
    %c0_i32_1 = arith.constant 0 : i32
    return %c0_i32, %c0_i32_0 : i32, i32
  }
  func.func @transform_7(%arg0: i32) -> (i32, i32) {
    %c0_i32 = arith.constant 0 : i32
    %c0_i32_0 = arith.constant 0 : i32
    return %arg0, %c0_i32 : i32, i32
  }
}

</mosaic_0001>

<bundles_post_ra>
// kernel: tpu_custom_call.1
= control target key start
LH: loop header
LB: loop body
LE: loop exit
PB: predicated region body
PF: predicated region fallthrough
CT: control target
= control target key end

     0   :  { %12 = vsyncpa [#allocation3], 0  ;;  %s1288_s0 = inlined_call_operand.hbm [shape: f32[2,32], index: 0, kind: input, shape index: {}]   ;;  %s1289_s1 = inlined_call_operand.vmem [shape: bf16[32,128], index: 1, kind: input, shape index: {}]   ;;  %s1290_s2 = inlined_call_operand.vmem [shape: f32[1,128], index: 2, kind: input, shape index: {}]   ;;  %s1291_s3 = inlined_call_operand.vmem [shape: bf16[128,512], index: 3, kind: input, shape index: {}]   ;;  %s1292_s4 = inlined_call_operand.vmem [shape: f32[1,512], index: 4, kind: input, shape index: {}]   ;;  %s1293_s5 = inlined_call_operand.vmem [shape: bf16[512,8], index: 5, kind: input, shape index: {}]   ;;  %s1294_s6 = inlined_call_operand.vmem [shape: f32[1,8], index: 6, kind: input, shape index: {}]   ;;  %s1295_s7 = inlined_call_operand.hbm [shape: f32[2,8], index: 7, kind: output, shape index: {}]  }
   0x1   :  { %13 = vsyncpa [#allocation4], 0  ;;  %s1030_s24 = smov [#allocation2]  }
   0x2   :  { %s20_s25 = sshll.u32 %s1030_s24, 4  ;;  %s21_s25 = int_to_ptr.vmem [resolvable:$true] %s20_s25 }
   0x3   :  { %s994_s26 = scalar_lea.vmem %s21_s25, 32  ;;  %p999_p1 = scmp.lt.s32.totalorder %s21_s25, %s21_s25 }
   0x4   :  { %p995_p0 = scmp.ne.s32.totalorder %s21_s25, %s994_s26  ;;  %p1000_p2 = scmp.lt.s32.totalorder %s994_s26, %s994_s26 }
   0x6   :  { %p1001_p3 = por %p1000_p2, %p999_p1 }
   0x8   :  { %p1002_p4 = pnand %p1001_p3, %p995_p0 }
   0xa   :  { %1005 = shalt.err (!%p1002_p4)
}
   0xb   :  { %23 = dma.hbm_to_vmem [thread:$0]  %s1288_s0, 32, %s21_s25, [#allocation3]  }
   0xc   :  { %1026 = dma.done.wait [#allocation3], 32  }
   0xd   :  { %1027 = vsyncadd [#allocation3], 4294967264  ;;  %v1031_v0 = vmov 0.0   ;;  %vm1032_vm0 = vmmov 0   ;;  %v904_v1 = vld [vmem:[%s1289_s1 + $0x8] sm:$0xff]   ;;  %v905_v2 = vld [vmem:[%s1289_s1] sm:$0xff]  }
   0xe   :  { %891 = vmatprep.subr.bf16.mxu0 %v1031_v0  ;;  %895 = vmatprep.mubr.msk.bf16.mxu0 %vm1032_vm0, %v1031_v0  ;;  %v40_v3 = vld [vmem:[#allocation2] sm:$0x3]  ;;  %v906_v4 = vld [vmem:[%s1291_s3 + $0xe4] ss:$16 sps:$4 sm:$0xff]   ;;  %v910_v5 = vld [vmem:[%s1291_s3 + $0xec] ss:$16 sps:$4 sm:$0xff]  }
   0xf   :  { %892 = vmatpush3.bf16.msra.mxu0 %v904_v1  ;;  %v911_v6 = vld [vmem:[%s1291_s3 + $0xe0] ss:$16 sps:$4 sm:$0xff]   ;;  %v41_v7 = vpack.c.bf16 %v40_v3, %v40_v3  ;;  %325 = vmatprep.subr.bf16.mxu1 %v906_v4  ;;  %v912_v8 = vld [vmem:[%s1291_s3 + $0xc4] ss:$16 sps:$4 sm:$0xff]   ;;  %vm65_vm1 = vcmask 261120   ;;  %v1033_v37 = vmov 0  }
  0x10   :  { %893 = vmatprep.subr.bf16.mxu0 %v1031_v0  ;;  %v908_v9 = vld [vmem:[%s1291_s3 + $0xe8] ss:$16 sps:$4 sm:$0xff]   ;;  %326 = vmatpush1.bf16.msra.mxu1 %v911_v6  ;;  %v916_v10 = vld [vmem:[%s1291_s3 + $0xcc] ss:$16 sps:$4 sm:$0xff]   ;;  %v917_v11 = vld [vmem:[%s1291_s3 + $0xc0] ss:$16 sps:$4 sm:$0xff]  }
  0x11   :  { %327 = vmatprep.subr.bf16.mxu1 %v912_v8  ;;  %v918_v12 = vld [vmem:[%s1291_s3 + $0xa4] ss:$16 sps:$4 sm:$0xff]   ;;  %v914_v13 = vld [vmem:[%s1291_s3 + $0xc8] ss:$16 sps:$4 sm:$0xff]   ;;  %v922_v14 = vld [vmem:[%s1291_s3 + $0xac] ss:$16 sps:$4 sm:$0xff]   ;;  %357 = vmatprep.mubr.bf16.mxu1 %v1033_v37 }
  0x12   :  { %v923_v15 = vld [vmem:[%s1291_s3 + $0xa0] ss:$16 sps:$4 sm:$0xff]   ;;  %v924_v16 = vld [vmem:[%s1291_s3 + $0x84] ss:$16 sps:$4 sm:$0xff]   ;;  %v920_v17 = vld [vmem:[%s1291_s3 + $0xa8] ss:$16 sps:$4 sm:$0xff]  }
  0x13   :  { %894 = vmatpush3.bf16.msra.mxu0 %v905_v2  ;;  %v929_v18 = vld [vmem:[%s1291_s3 + $0x80] ss:$16 sps:$4 sm:$0xff]   ;;  %v928_v19 = vld [vmem:[%s1291_s3 + $0x8c] ss:$16 sps:$4 sm:$0xff]   ;;  %v930_v20 = vld [vmem:[%s1291_s3 + $0x64] ss:$16 sps:$4 sm:$0xff]  }
  0x14   :  { %366 = vmatprep.subr.bf16.mxu0 %v910_v5  ;;  %328 = vmatpush1.bf16.msra.mxu1 %v917_v11  ;;  %v926_v21 = vld [vmem:[%s1291_s3 + $0x88] ss:$16 sps:$4 sm:$0xff]   ;;  %v934_v22 = vld [vmem:[%s1291_s3 + $0x6c] ss:$16 sps:$4 sm:$0xff]   ;;  %v935_v23 = vld [vmem:[%s1291_s3 + $0x60] ss:$16 sps:$4 sm:$0xff]  }
  0x15   :  { %329 = vmatprep.subr.bf16.mxu1 %v918_v12  ;;  %v936_v24 = vld [vmem:[%s1291_s3 + $0x44] ss:$16 sps:$4 sm:$0xff]   ;;  %v932_v25 = vld [vmem:[%s1291_s3 + $0x68] ss:$16 sps:$4 sm:$0xff]   ;;  %v941_v26 = vld [vmem:[%s1291_s3 + $0x40] ss:$16 sps:$4 sm:$0xff]  }
  0x16   :  { %896 = vmatmul.mubr.msk.bf16.vlgmr.msra.gmra.mxu0 %vm65_vm1, %v41_v7  ;;  %v940_v27 = vld [vmem:[%s1291_s3 + $0x4c] ss:$16 sps:$4 sm:$0xff]   ;;  %v942_v28 = vld [vmem:[%s1291_s3 + $0x24] ss:$16 sps:$4 sm:$0xff]   ;;  %v938_v29 = vld [vmem:[%s1291_s3 + $0x48] ss:$16 sps:$4 sm:$0xff]  }
  0x17   :  { %367 = vmatpush1.bf16.msra.mxu0 %v908_v9  ;;  %v946_v30 = vld [vmem:[%s1291_s3 + $0x2c] ss:$16 sps:$4 sm:$0xff]   ;;  %v944_v31 = vld [vmem:[%s1291_s3 + $0x28] ss:$16 sps:$4 sm:$0xff]   ;;  %v947_v32 = vld [vmem:[%s1291_s3 + $0x20] ss:$16 sps:$4 sm:$0xff]   ;;  %398 = vmatprep.mubr.bf16.mxu0 %v1033_v37 }
  0x18   :  { %368 = vmatprep.subr.bf16.mxu0 %v916_v10  ;;  %330 = vmatpush1.bf16.msra.mxu1 %v923_v15  ;;  %v948_v33 = vld [vmem:[%s1291_s3 + $0x4] ss:$16 sps:$4 sm:$0xff]   ;;  %v952_v34 = vld [vmem:[%s1291_s3 + $0xc] ss:$16 sps:$4 sm:$0xff]   ;;  %v950_v35 = vld [vmem:[%s1291_s3 + $0x8] ss:$16 sps:$4 sm:$0xff]  }
  0x19   :  { %331 = vmatprep.subr.bf16.mxu1 %v924_v16  ;;  %v953_v36 = vld [vmem:[%s1291_s3] ss:$16 sps:$4 sm:$0xff]   ;;  %v954_v38 = vld [vmem:[%s1293_s5 + $0x78] sm:$0xff]   ;;  %v962_v54 = vld [vmem:[%s1293_s5 + $0x68] sm:$0xff]   ;;  %s1034_s11 = smov [#allocation5]   ;;  %vm758_vm2 = vcmask 58368  }
  0x1a   :  { %v955_v39 = vld [vmem:[%s1293_s5 + $0xf8] sm:$0xff]   ;;  %v775_v40 = vld [vmem:[%s1290_s2] ss:$0 sm:$0xff]  ;;  %v958_v49 = vld [vmem:[%s1293_s5 + $0x70] sm:$0xff]   ;;  %s766_s0 = sshll.u32 %s1034_s11, 4  ;;  %s767_s0 = int_to_ptr.vmem [resolvable:$true] %s766_s0 }
  0x1b   :  { %369 = vmatpush1.bf16.msra.mxu0 %v914_v13  ;;  %v956_v46 = vld [vmem:[%s1293_s5 + $0x38] sm:$0xff]   ;;  %v959_v50 = vld [vmem:[%s1293_s5 + $0xf0] sm:$0xff]   ;;  %v963_v55 = vld [vmem:[%s1293_s5 + $0xe8] sm:$0xff]   ;;  %s1006_s12 = scalar_lea.vmem %s767_s0, 32  ;;  %p1011_p6 = scmp.lt.s32.totalorder %s767_s0, %s767_s0 }
  0x1c   :  { %370 = vmatprep.subr.bf16.mxu0 %v922_v14  ;;  %332 = vmatpush1.bf16.msra.mxu1 %v929_v18  ;;  %v957_v47 = vld [vmem:[%s1293_s5 + $0xb8] sm:$0xff]   ;;  %v960_v52 = vld [vmem:[%s1293_s5 + $0x30] sm:$0xff]   ;;  %v964_v56 = vld [vmem:[%s1293_s5 + $0x28] sm:$0xff]   ;;  %v145_v14 = vlaneseq  ;;  %p1007_p5 = scmp.ne.s32.totalorder %s767_s0, %s1006_s12  ;;  %p1012_p7 = scmp.lt.s32.totalorder %s1006_s12, %s1006_s12 }
  0x1d   :  { %333 = vmatprep.subr.bf16.mxu1 %v930_v20  ;;  %v961_v53 = vld [vmem:[%s1293_s5 + $0xb0] sm:$0xff]   ;;  %v965_v57 = vld [vmem:[%s1293_s5 + $0xa8] sm:$0xff]   ;;  %v966_v58 = vld [vmem:[%s1293_s5 + $0x60] sm:$0xff]  }
  0x1e   :  { %v967_v59 = vld [vmem:[%s1293_s5 + $0xe0] sm:$0xff]   ;;  %v970_v62 = vld [vmem:[%s1293_s5 + $0x58] sm:$0xff]   ;;  %v974_v2 = vld [vmem:[%s1293_s5 + $0x50] sm:$0xff]   ;;  %v146_v15 = vshrl.u32 %v145_v14, 7  ;;  %p1013_p8 = por %p1012_p7, %p1011_p6 }
  0x1f   :  { %371 = vmatpush1.bf16.msra.mxu0 %v920_v17  ;;  %v968_v60 = vld [vmem:[%s1293_s5 + $0x20] sm:$0xff]   ;;  %v971_v63 = vld [vmem:[%s1293_s5 + $0xd8] sm:$0xff]   ;;  %v975_v3 = vld [vmem:[%s1293_s5 + $0xd0] sm:$0xff]  }
  0x20   :  { %372 = vmatprep.subr.bf16.mxu0 %v928_v19  ;;  %334 = vmatpush1.bf16.msra.mxu1 %v935_v23  ;;  %v969_v61 = vld [vmem:[%s1293_s5 + $0xa0] sm:$0xff]   ;;  %v972_v0 = vld [vmem:[%s1293_s5 + $0x18] sm:$0xff]   ;;  %v976_v4 = vld [vmem:[%s1293_s5 + $0x10] sm:$0xff]   ;;  %v147_v16 = vsub.s32 0, %v146_v15  ;;  %v155_v17 = vsub.s32 2, %v146_v15  ;;  %v151_v19 = vsub.s32 1, %v146_v15  ;;  %p1014_p9 = pnand %p1013_p8, %p1007_p5 }
  0x21   :  { %335 = vmatprep.subr.bf16.mxu1 %v936_v24  ;;  %v973_v1 = vld [vmem:[%s1293_s5 + $0x98] sm:$0xff]   ;;  %v977_v5 = vld [vmem:[%s1293_s5 + $0x90] sm:$0xff]   ;;  %v978_v6 = vld [vmem:[%s1293_s5 + $0x48] sm:$0xff]   ;;  %v159_v20 = vsub.s32 3, %v146_v15 }
  0x22   :  { %v979_v7 = vld [vmem:[%s1293_s5 + $0xc8] sm:$0xff]   ;;  %v982_v10 = vld [vmem:[%s1293_s5 + $0x40] sm:$0xff]  }
  0x23   :  { %373 = vmatpush1.bf16.msra.mxu0 %v926_v21  ;;  %v980_v8 = vld [vmem:[%s1293_s5 + $0x8] sm:$0xff]   ;;  %v983_v11 = vld [vmem:[%s1293_s5 + $0xc0] sm:$0xff]  }
  0x24   :  { %374 = vmatprep.subr.bf16.mxu0 %v934_v22  ;;  %336 = vmatpush1.bf16.msra.mxu1 %v941_v26  ;;  %v981_v9 = vld [vmem:[%s1293_s5 + $0x88] sm:$0xff]   ;;  %v984_v12 = vld [vmem:[%s1293_s5] sm:$0xff]  }
  0x25   :  { %337 = vmatprep.subr.bf16.mxu1 %v942_v28  ;;  %v985_v13 = vld [vmem:[%s1293_s5 + $0x80] sm:$0xff]  }
  0x26   :  { %v143_v18 = vld [vmem:[%s1292_s4] sm:$0xf] }
  0x27   :  { %375 = vmatpush1.bf16.msra.mxu0 %v932_v25  ;;  %v148_v21 = vrot.slane %v143_v18, %v147_v16  ;;  %v156_v22 = vrot.slane %v143_v18, %v155_v17  ;;  %v152_v23 = vrot.slane %v143_v18, %v151_v19  ;;  %v160_v24 = vrot.slane %v143_v18, %v159_v20 }
  0x28   :  { %376 = vmatprep.subr.bf16.mxu0 %v940_v27  ;;  %338 = vmatpush1.bf16.msra.mxu1 %v947_v32 }
  0x29   :  { %339 = vmatprep.subr.bf16.mxu1 %v948_v33 }
  0x2b   :  { %377 = vmatpush1.bf16.msra.mxu0 %v938_v29 }
  0x2c   :  { %378 = vmatprep.subr.bf16.mxu0 %v946_v30  ;;  %340 = vmatpush1.bf16.msra.mxu1 %v953_v36 }
  0x2d   :  { %847 = vmatprep.subr.bf16.mxu1 %v954_v38 }
  0x2f   :  { %379 = vmatpush1.bf16.msra.mxu0 %v944_v31 }
  0x30   :  { %380 = vmatprep.subr.bf16.mxu0 %v952_v34 }
  0x33   :  { %381 = vmatpush1.bf16.msra.mxu0 %v950_v35 }
  0x34   :  { %869 = vmatprep.subr.bf16.mxu0 %v955_v39 }
  0xd6   :  { %v103_v41 = vpop.f32.mrf.mxu0 }
  0xd7   :  { %v104_v42 = vadd.f32 %v775_v40, %v103_v41 }
  0xd8   :  { %v897_v43 = vpop.f32.mrf.mxu0 }
  0xd9   :  { %v109_v44 = vmax.f32 %v104_v42, 0.0 }
  0xda   :  { %v106_v45 = vpop.f32.mrf.mxu0 }
  0xdb   :  { %v110_v48 = vpack.c.bf16 %v109_v44, %v109_v44 }
  0xdc   :  { %v898_v51 = vpop.f32.mrf.mxu0 }
  0xdd   :  { %358 = vmatmul.mubr.bf16.vlgmr.msra.gmra.mxu1 %v110_v48  ;;  %399 = vmatmul.mubr.bf16.vlgmr.msra.gmra.mxu0 %v110_v48 }
  0xde   :  { %848 = vmatpush3.bf16.msra.mxu1 %v956_v46  ;;  %870 = vmatpush3.bf16.msra.mxu0 %v957_v47  ;;  %v811_v47 = vld [vmem:[%s1294_s6] ss:$0 sm:$0xff] }
  0xdf   :  { %849 = vmatprep.subr.bf16.mxu1 %v958_v49  ;;  %871 = vmatprep.subr.bf16.mxu0 %v959_v50 }
  0xe2   :  { %850 = vmatpush3.bf16.msra.mxu1 %v960_v52  ;;  %872 = vmatpush3.bf16.msra.mxu0 %v961_v53 }
  0xe3   :  { %851 = vmatprep.subr.bf16.mxu1 %v962_v54  ;;  %873 = vmatprep.subr.bf16.mxu0 %v963_v55 }
  0xe6   :  { %852 = vmatpush3.bf16.msra.mxu1 %v964_v56  ;;  %874 = vmatpush3.bf16.msra.mxu0 %v965_v57 }
  0xe7   :  { %853 = vmatprep.subr.bf16.mxu1 %v966_v58  ;;  %875 = vmatprep.subr.bf16.mxu0 %v967_v59 }
  0xea   :  { %854 = vmatpush3.bf16.msra.mxu1 %v968_v60  ;;  %876 = vmatpush3.bf16.msra.mxu0 %v969_v61 }
  0xeb   :  { %855 = vmatprep.subr.bf16.mxu1 %v970_v62  ;;  %877 = vmatprep.subr.bf16.mxu0 %v971_v63 }
  0xee   :  { %856 = vmatpush3.bf16.msra.mxu1 %v972_v0  ;;  %878 = vmatpush3.bf16.msra.mxu0 %v973_v1 }
  0xef   :  { %857 = vmatprep.subr.bf16.mxu1 %v974_v2  ;;  %879 = vmatprep.subr.bf16.mxu0 %v975_v3 }
  0xf2   :  { %858 = vmatpush3.bf16.msra.mxu1 %v976_v4  ;;  %880 = vmatpush3.bf16.msra.mxu0 %v977_v5 }
  0xf3   :  { %859 = vmatprep.subr.bf16.mxu1 %v978_v6  ;;  %881 = vmatprep.subr.bf16.mxu0 %v979_v7 }
  0xf6   :  { %860 = vmatpush3.bf16.msra.mxu1 %v980_v8  ;;  %882 = vmatpush3.bf16.msra.mxu0 %v981_v9 }
  0xf7   :  { %861 = vmatprep.subr.bf16.mxu1 %v982_v10  ;;  %883 = vmatprep.subr.bf16.mxu0 %v983_v11 }
  0xfa   :  { %862 = vmatpush3.bf16.msra.mxu1 %v984_v12  ;;  %884 = vmatpush3.bf16.msra.mxu0 %v985_v13 }
 0x19d   :  { %v359_v25 = vpop.f32.mrf.mxu1  ;;  %v400_v26 = vpop.f32.mrf.mxu0 }
 0x19e   :  { %v360_v27 = vadd.f32 %v359_v25, %v148_v21  ;;  %v401_v28 = vadd.f32 %v400_v26, %v156_v22 }
 0x19f   :  { %v361_v29 = vpop.f32.mrf.mxu1  ;;  %v402_v30 = vpop.f32.mrf.mxu0 }
 0x1a0   :  { %v362_v31 = vadd.f32 %v361_v29, %v152_v23  ;;  %v403_v32 = vadd.f32 %v402_v30, %v160_v24  ;;  %v407_v33 = vmax.f32 %v360_v27, 0.0  ;;  %v409_v34 = vmax.f32 %v401_v28, 0.0 }
 0x1a1   :  { %v363_v35 = vpop.f32.mrf.mxu1  ;;  %v404_v36 = vpop.f32.mrf.mxu0 }
 0x1a2   :  { %v408_v37 = vmax.f32 %v362_v31, 0.0  ;;  %v410_v38 = vmax.f32 %v403_v32, 0.0  ;;  %v411_v43 = vpack.c.bf16 %v407_v33, %v407_v33  ;;  %v413_v44 = vpack.c.bf16 %v409_v34, %v409_v34 }
 0x1a3   :  { %v364_v39 = vpop.f32.mrf.mxu1  ;;  %v405_v40 = vpop.f32.mrf.mxu0 }
 0x1a4   :  { %v412_v41 = vpack.c.bf16 %v408_v37, %v408_v37  ;;  %v414_v42 = vpack.c.bf16 %v410_v38, %v410_v38 }
 0x1a6   :  { %710 = vmatprep.mubr.bf16.mxu1 %v412_v41  ;;  %750 = vmatprep.mubr.bf16.mxu0 %v414_v42 }
 0x1a7   :  { %711 = vmatmul.mubr.bf16.vlgmr.msra.gmra.mxu1 %v411_v43  ;;  %751 = vmatmul.mubr.bf16.vlgmr.msra.gmra.mxu0 %v413_v44 }
 0x267   :  { %v863_v45 = vpop.f32.mrf.mxu1  ;;  %v885_v46 = vpop.f32.mrf.mxu0 }
 0x269   :  { %v864_v48 = vpop.f32.mrf.mxu1  ;;  %v886_v49 = vpop.f32.mrf.mxu0 }
 0x26a   :  { %v865_v50 = vadd.f32 %v864_v48, %v863_v45  ;;  %v887_v54 = vadd.f32 %v886_v49, %v885_v46 }
 0x26b   :  { %v866_v51 = vpop.f32.mrf.mxu1  ;;  %v888_v52 = vpop.f32.mrf.mxu0 }
 0x26c   :  { %v713_v53 = vadd.f32 %v865_v50, %v811_v47 }
 0x26d   :  { %v867_v55 = vpop.f32.mrf.mxu1  ;;  %v889_v56 = vpop.f32.mrf.mxu0 }
 0x26e   :  { %v753_v57 = vadd.f32 %v887_v54, %v713_v53 }
 0x270   :  { %759 = vst.msk [vmem:[#allocation5] sm:$0x3] %vm758_vm2, %v753_v57 }
 0x271   :  { %1017 = shalt.err (!%p1014_p9)
}
 0x272   :  { %769 = dma.vmem_to_hbm [thread:$0]  %s767_s0, 32, %s1295_s7, [#allocation4]  }
 0x273   :  { %1028 = dma.done.wait [#allocation4], 32  }
 0x274   :  { %1029 = vsyncadd [#allocation4], 4294967264 }
 0x275   :  { %773 = vsyncpa [#allocation3], 1 }
 0x276   :  { %774 = vsyncpa [#allocation4], 1 }

</bundles_post_ra>
